<compile_context>
chip_gen: v5e
topology: v5e:2x2
jax: 0.10.0
libtpu: 0.0.40
codegen_flags: <defaults>
</compile_context>

<pallas_src>
import functools

import jax
import jax.numpy as jnp
from jax.experimental import pallas as pl
from jax.experimental.pallas import tpu as pltpu


_VMEM_LIMIT_BYTES = 64 * 1024 * 1024


def _round_up(v, m):
    return (v + m - 1) // m * m


def _pick_row_tile(n, hc):
    """Target-row tile size TM: multiple of 8, <= 128, chosen so ~4 f32
    intermediates of shape [TM, N_pad, lane-padded HC] stay under ~20 MiB
    (fits v7x's 64 MiB VMEM with pipelining headroom)."""
    n8 = _round_up(max(n, 1), 8)
    lanes = _round_up(max(hc, 1), 128)
    budget = 20 * 1024 * 1024
    tm = 128
    while tm > 8 and 4 * tm * n8 * lanes * 4 > budget:
        tm //= 2
    # TODO(synk): for very large graphs also tile the source axis
    # (flash-style online softmax) instead of only shrinking TM.
    return min(max(tm, 8), n8)


# ----------------------------------------------------------------------------
# Kernel 1: linear projections (bf16 operands on the MXU, f32 accumulation)
# ----------------------------------------------------------------------------
def _proj_kernel(x_ref, wl_ref, wr_ref, bl_ref, br_ref, xl_ref, xr_ref):
    x = x_ref[...]                                            # [TM, Fin] bf16
    xl_ref[...] = jnp.dot(x, wl_ref[...],
                          preferred_element_type=jnp.float32) + bl_ref[...]
    xr_ref[...] = jnp.dot(x, wr_ref[...],
                          preferred_element_type=jnp.float32) + br_ref[...]


# ----------------------------------------------------------------------------
# Kernel 2: GATv2 attention + aggregation for one tile of TM target rows
# ----------------------------------------------------------------------------
def _gatv2_attn_kernel(xl_ref, xr_ref, mask_ref, att_ref, bias_ref, *out_refs,
                       negative_slope, apply_elu, apply_log_softmax):
    xl = xl_ref[...]                                  # [Np, HC] source proj (+bl)
    xr = xr_ref[...]                                  # [TM, HC] target proj (+br)
    mask = mask_ref[...]                              # [TM, Np] additive mask
    tm, hc = xr.shape
    npad = xl.shape[0]

    # pairwise leaky_relu(x_i + x_j) once over the full lane width (all heads)
    s = xr[:, None, :] + xl[None, :, :]               # [TM, Np, HC] f32
    s = jnp.where(s > 0, s, negative_slope * s)

    # All-head logits with ONE MXU matmul against the block-expanded attention
    # matrix: column k carries att[head(k)], so head-h logits are replicated
    # across that head's C lanes (free: lanes pad to 128 anyway for HC <= 128).
    e = jnp.dot(s.reshape(tm * npad, hc), att_ref[...],
                preferred_element_type=jnp.float32)   # [TM*Np, HC]
    e = e.reshape(tm, npad, hc) + mask[:, :, None]    # -1e30 on non-edges

    # Unnormalized, numerically stable softmax over the source axis j.
    # Every row has a self-loop (identity folded into the mask), so denom > 0.
    e_max = jnp.max(e, axis=1, keepdims=True)         # [TM, 1, HC]
    p = jnp.exp(e - e_max)                            # masked entries -> 0.0
    denom = jnp.sum(p, axis=1)                        # [TM, HC]

    # Full-lane-width aggregation; normalize AFTER with an EUP reciprocal.
    acc = jnp.sum(p * xl[None, :, :], axis=1)         # [TM, HC]
    out = acc * pl.reciprocal(denom, approx=True) + bias_ref[...]

    if apply_elu:                                     # F.elu (alpha = 1)
        out = jnp.where(out > 0, out, jnp.expm1(out))
    out_refs[0][...] = out

    if apply_log_softmax:                             # fused F.log_softmax(dim=1)
        m = jnp.max(out, axis=1, keepdims=True)
        z = out - m
        out_refs[1][...] = z - jnp.log(jnp.sum(jnp.exp(z), axis=1, keepdims=True))


# ----------------------------------------------------------------------------
# One GATv2Conv layer (concat=True)
# ----------------------------------------------------------------------------
def _expand_att(att, heads, out_ch):
    """[H, C] per-head attention vectors -> block-diagonal [HC, HC] matrix A
    with A[h*C + c, h*C + c2] = att[h, c] for every c2, zeros elsewhere."""
    hc = heads * out_ch
    a = jnp.zeros((hc, hc), jnp.float32)
    for h in range(heads):
        blk = jnp.broadcast_to(att[h][:, None], (out_ch, out_ch))
        a = a.at[h * out_ch:(h + 1) * out_ch, h * out_ch:(h + 1) * out_ch].set(blk)
    return a


def gatv2_conv(x_pad, mask, params, *, heads, out_ch, tm, negative_slope=0.2,
               apply_elu=False, apply_log_softmax=False):
    """x_pad: [N_pad, Fin] -> [N_pad, heads*out_ch] (plus log_softmax output
    when apply_log_softmax=True)."""
    n_pad, fin = x_pad.shape
    wl, wr, bl, br, att, bias = params
    hc = heads * out_ch
    grid = (n_pad // tm,)
    cparams = pltpu.CompilerParams(dimension_semantics=("parallel",),
                                   vmem_limit_bytes=_VMEM_LIMIT_BYTES)

    # 1) projections, row-tiled
    xl, xr = pl.pallas_call(
        _proj_kernel,
        out_shape=(jax.ShapeDtypeStruct((n_pad, hc), jnp.float32),
                   jax.ShapeDtypeStruct((n_pad, hc), jnp.float32)),
        grid=grid,
        in_specs=[pl.BlockSpec((tm, fin), lambda i: (i, 0)),
                  pl.BlockSpec((fin, hc), lambda i: (0, 0)),
                  pl.BlockSpec((fin, hc), lambda i: (0, 0)),
                  pl.BlockSpec((1, hc), lambda i: (0, 0)),
                  pl.BlockSpec((1, hc), lambda i: (0, 0))],
        out_specs=(pl.BlockSpec((tm, hc), lambda i: (i, 0)),
                   pl.BlockSpec((tm, hc), lambda i: (i, 0))),
        compiler_params=cparams,
    )(x_pad.astype(jnp.bfloat16), wl.astype(jnp.bfloat16),
      wr.astype(jnp.bfloat16), bl, br)

    # 2) attention + aggregation, gridded over target-row tiles
    att_exp = _expand_att(att, heads, out_ch)
    kernel = functools.partial(_gatv2_attn_kernel,
                               negative_slope=negative_slope,
                               apply_elu=apply_elu,
                               apply_log_softmax=apply_log_softmax)
    n_out = 2 if apply_log_softmax else 1
    out_shape = tuple(jax.ShapeDtypeStruct((n_pad, hc), jnp.float32)
                      for _ in range(n_out))
    out_specs = tuple(pl.BlockSpec((tm, hc), lambda i: (i, 0))
                      for _ in range(n_out))

    outs = pl.pallas_call(
        kernel,
        out_shape=out_shape,
        grid=grid,
        in_specs=[pl.BlockSpec((n_pad, hc), lambda i: (0, 0)),   # xl (resident)
                  pl.BlockSpec((tm, hc), lambda i: (i, 0)),      # xr row tile
                  pl.BlockSpec((tm, n_pad), lambda i: (i, 0)),   # mask row tile
                  pl.BlockSpec((hc, hc), lambda i: (0, 0)),      # expanded att
                  pl.BlockSpec((1, hc), lambda i: (0, 0))],      # output bias
        out_specs=out_specs,
        compiler_params=cparams,
    )(xl, xr, mask, att_exp, bias)
    return outs if apply_log_softmax else outs[0]


# ----------------------------------------------------------------------------
# Parameter init (deterministic, glorot-uniform like PyG; biases zero)
# ----------------------------------------------------------------------------
def _glorot(key, shape):
    lim = (6.0 / (shape[0] + shape[1])) ** 0.5
    return jax.random.uniform(key, shape, jnp.float32, -lim, lim)


def init_gatv2_params(key, in_ch, out_ch, heads):
    k0, k1, k2 = jax.random.split(key, 3)
    wl = _glorot(k0, (in_ch, heads * out_ch))           # lin_l weight (source)
    wr = _glorot(k1, (in_ch, heads * out_ch))           # lin_r weight (target)
    bl = jnp.zeros((1, heads * out_ch), jnp.float32)    # lin_l bias
    br = jnp.zeros((1, heads * out_ch), jnp.float32)    # lin_r bias
    att = _glorot(k2, (heads, out_ch))                  # attention vector / head
    bias = jnp.zeros((1, heads * out_ch), jnp.float32)  # output bias (concat)
    return (wl, wr, bl, br, att, bias)


# ----------------------------------------------------------------------------
# Full GAT forward
# ----------------------------------------------------------------------------
def gat_forward(x, edge_index, params, *, heads, dim_h, dim_out):
    n = x.shape[0]
    tm = _pick_row_tile(n, max(heads * dim_h, dim_out))
    n_pad = _round_up(n, tm)

    x_pad = jnp.zeros((n_pad, x.shape[1]), jnp.float32).at[:n, :].set(x)

    # Dense adjacency (adj[i, j] = 1 iff edge j -> i, plus self-loops, matching
    # PyG's remove_self_loops + add_self_loops), converted to an ADDITIVE mask:
    # 0 on edges / self-loops, -1e30 elsewhere.  The identity also covers the
    # padded rows so every softmax row has a strictly positive denominator.
    src, dst = edge_index[0], edge_index[1]
    adj = jnp.zeros((n_pad, n_pad), jnp.float32).at[dst, src].set(1.0)
    adj = jnp.maximum(adj, jnp.eye(n_pad, dtype=jnp.float32))
    mask = (adj - 1.0) * 1e30

    # dropout (eval mode) -> identity
    h = gatv2_conv(x_pad, mask, params["gat1"], heads=heads, out_ch=dim_h,
                   tm=tm, apply_elu=True)                # gat1 + fused F.elu
    # dropout (eval mode) -> identity
    h, logp = gatv2_conv(h, mask, params["gat2"], heads=1, out_ch=dim_out,
                         tm=tm, apply_log_softmax=True)  # gat2 + fused log_softmax
    return h[:n], logp[:n]


if __name__ == "__main__":
    key = jax.random.PRNGKey(0)
    n_nodes, dim_in, dim_h, dim_out, heads = 16, 8, 8, 4, 8

    kx, k1, k2 = jax.random.split(key, 3)
    x = jax.random.normal(kx, (n_nodes, dim_in), jnp.float32)

    # deterministic ring graph, both directions, no duplicate edges
    idx = jnp.arange(n_nodes, dtype=jnp.int32)
    src = jnp.concatenate([idx, (idx + 1) % n_nodes])
    dst = jnp.concatenate([(idx + 1) % n_nodes, idx])
    edge_index = jnp.stack([src, dst])                   # [2, E]

    params = {
        "gat1": init_gatv2_params(k1, dim_in, dim_h, heads),
        "gat2": init_gatv2_params(k2, dim_h * heads, dim_out, 1),
    }

    h, logp = gat_forward(x, edge_index, params,
                          heads=heads, dim_h=dim_h, dim_out=dim_out)
    jax.block_until_ready((h, logp))

    assert h.shape == (n_nodes, dim_out)
    assert logp.shape == (n_nodes, dim_out)
    assert bool(jnp.all(jnp.isfinite(h))) and bool(jnp.all(jnp.isfinite(logp)))
    print("KERNEL_OK")
</pallas_src>

<mosaic_0001>
module attributes {stable_mosaic.version = 11 : i64} {
  func.func @_proj_kernel(%arg0: i32, %arg1: memref<16x8xbf16, #tpu.memory_space<vmem>>, %arg2: memref<8x64xbf16, #tpu.memory_space<vmem>>, %arg3: memref<8x64xbf16, #tpu.memory_space<vmem>>, %arg4: memref<1x64xf32, #tpu.memory_space<vmem>>, %arg5: memref<1x64xf32, #tpu.memory_space<vmem>>, %arg6: memref<16x64xf32, #tpu.memory_space<vmem>>, %arg7: memref<16x64xf32, #tpu.memory_space<vmem>>) attributes {dimension_semantics = [#tpu.dimension_semantics<parallel>], iteration_bounds = array<i64: 1>, scalar_prefetch = 0 : i64, scratch_operands = 0 : i64, tpu.core_type = #tpu.core_type<tc>, window_params = [{transform_indices = @transform_0, window_bounds = array<i64: 16, 8>}, {pipeline_mode = #tpu.pipeline_mode<synchronous>, transform_indices = @transform_1, window_bounds = array<i64: 8, 64>}, {pipeline_mode = #tpu.pipeline_mode<synchronous>, transform_indices = @transform_2, window_bounds = array<i64: 8, 64>}, {pipeline_mode = #tpu.pipeline_mode<synchronous>, transform_indices = @transform_3, window_bounds = array<i64: 1, 64>}, {pipeline_mode = #tpu.pipeline_mode<synchronous>, transform_indices = @transform_4, window_bounds = array<i64: 1, 64>}, {transform_indices = @transform_5, window_bounds = array<i64: 16, 64>}, {transform_indices = @transform_6, window_bounds = array<i64: 16, 64>}]} {
    %c0 = arith.constant 0 : index
    %c0_0 = arith.constant 0 : index
    %0 = vector.load %arg1[%c0, %c0_0] : memref<16x8xbf16, #tpu.memory_space<vmem>>, vector<16x8xbf16>
    %c0_1 = arith.constant 0 : index
    %c0_2 = arith.constant 0 : index
    %1 = vector.load %arg2[%c0_1, %c0_2] : memref<8x64xbf16, #tpu.memory_space<vmem>>, vector<8x64xbf16>
    %cst = arith.constant dense<0.000000e+00> : vector<16x64xf32>
    %2 = tpu.matmul %0, %1, %cst {dimension_numbers = #tpu.dot_dimension_numbers<[1], [0], [0], [1], [0, 0, 1, 1], [], []>} : vector<16x8xbf16>, vector<8x64xbf16>, vector<16x64xf32> -> vector<16x64xf32>
    %c0_3 = arith.constant 0 : index
    %c0_4 = arith.constant 0 : index
    %3 = vector.load %arg4[%c0_3, %c0_4] : memref<1x64xf32, #tpu.memory_space<vmem>>, vector<1x64xf32>
    %4 = vector.broadcast %3 : vector<1x64xf32> to vector<16x64xf32>
    %5 = arith.addf %2, %4 : vector<16x64xf32>
    %c0_5 = arith.constant 0 : index
    %c0_6 = arith.constant 0 : index
    %6 = vector.load %arg6[%c0_5, %c0_6] : memref<16x64xf32, #tpu.memory_space<vmem>>, vector<16x64xf32>
    tpu.vector_store %arg6[%c0_5, %c0_6], %5 {strides = array<i32>} : memref<16x64xf32, #tpu.memory_space<vmem>>, vector<16x64xf32>,
    %c0_7 = arith.constant 0 : index
    %c0_8 = arith.constant 0 : index
    %7 = vector.load %arg3[%c0_7, %c0_8] : memref<8x64xbf16, #tpu.memory_space<vmem>>, vector<8x64xbf16>
    %cst_9 = arith.constant dense<0.000000e+00> : vector<16x64xf32>
    %8 = tpu.matmul %0, %7, %cst_9 {dimension_numbers = #tpu.dot_dimension_numbers<[1], [0], [0], [1], [0, 0, 1, 1], [], []>} : vector<16x8xbf16>, vector<8x64xbf16>, vector<16x64xf32> -> vector<16x64xf32>
    %c0_10 = arith.constant 0 : index
    %c0_11 = arith.constant 0 : index
    %9 = vector.load %arg5[%c0_10, %c0_11] : memref<1x64xf32, #tpu.memory_space<vmem>>, vector<1x64xf32>
    %10 = vector.broadcast %9 : vector<1x64xf32> to vector<16x64xf32>
    %11 = arith.addf %8, %10 : vector<16x64xf32>
    %c0_12 = arith.constant 0 : index
    %c0_13 = arith.constant 0 : index
    %12 = vector.load %arg7[%c0_12, %c0_13] : memref<16x64xf32, #tpu.memory_space<vmem>>, vector<16x64xf32>
    tpu.vector_store %arg7[%c0_12, %c0_13], %11 {strides = array<i32>} : memref<16x64xf32, #tpu.memory_space<vmem>>, vector<16x64xf32>,
    return
  }
  func.func @transform_0(%arg0: i32) -> (i32, i32) {
    %c0_i32 = arith.constant 0 : i32
    %c0_i32_0 = arith.constant 0 : i32
    return %arg0, %c0_i32 : i32, i32
  }
  func.func @transform_1(%arg0: i32) -> (i32, i32) {
    %c0_i32 = arith.constant 0 : i32
    %c0_i32_0 = arith.constant 0 : i32
    %c0_i32_1 = arith.constant 0 : i32
    return %c0_i32, %c0_i32_0 : i32, i32
  }
  func.func @transform_2(%arg0: i32) -> (i32, i32) {
    %c0_i32 = arith.constant 0 : i32
    %c0_i32_0 = arith.constant 0 : i32
    %c0_i32_1 = arith.constant 0 : i32
    return %c0_i32, %c0_i32_0 : i32, i32
  }
  func.func @transform_3(%arg0: i32) -> (i32, i32) {
    %c0_i32 = arith.constant 0 : i32
    %c0_i32_0 = arith.constant 0 : i32
    %c0_i32_1 = arith.constant 0 : i32
    return %c0_i32, %c0_i32_0 : i32, i32
  }
  func.func @transform_4(%arg0: i32) -> (i32, i32) {
    %c0_i32 = arith.constant 0 : i32
    %c0_i32_0 = arith.constant 0 : i32
    %c0_i32_1 = arith.constant 0 : i32
    return %c0_i32, %c0_i32_0 : i32, i32
  }
  func.func @transform_5(%arg0: i32) -> (i32, i32) {
    %c0_i32 = arith.constant 0 : i32
    %c0_i32_0 = arith.constant 0 : i32
    return %arg0, %c0_i32 : i32, i32
  }
  func.func @transform_6(%arg0: i32) -> (i32, i32) {
    %c0_i32 = arith.constant 0 : i32
    %c0_i32_0 = arith.constant 0 : i32
    return %arg0, %c0_i32 : i32, i32
  }
}

</mosaic_0001>

<bundles_post_ra>
// kernel: tpu_custom_call.1
= control target key start
LH: loop header
LB: loop body
LE: loop exit
PB: predicated region body
PF: predicated region fallthrough
CT: control target
= control target key end

     0   :  { %12 = vsyncpa [#allocation3], 0  ;;  %vm41_vm0 = vcmask 1043456   ;;  %vm37_vm1 = vcmask 64512   ;;  %s251_s0 = inlined_call_operand.vmem [shape: bf16[16,8], index: 0, kind: input, shape index: {}]   ;;  %s252_s1 = inlined_call_operand.vmem [shape: bf16[8,64], index: 1, kind: input, shape index: {}]   ;;  %s253_s2 = inlined_call_operand.vmem [shape: bf16[8,64], index: 2, kind: input, shape index: {}]   ;;  %s254_s3 = inlined_call_operand.vmem [shape: f32[1,64], index: 3, kind: input, shape index: {}]   ;;  %s255_s4 = inlined_call_operand.vmem [shape: f32[1,64], index: 4, kind: input, shape index: {}]   ;;  %s256_s5 = inlined_call_operand.hbm [shape: f32[16,64], index: 5, kind: output, shape index: {0}]   ;;  %s257_s6 = inlined_call_operand.hbm [shape: f32[16,64], index: 6, kind: output, shape index: {1}]  }
   0x1   :  { %v27_v0 = vld [vmem:[%s252_s1] sm:$0xf] }
   0x2   :  { %v62_v1 = vld [vmem:[%s253_s2] sm:$0xf]  ;;  %v43_v2 = vsel %vm41_vm0, %v27_v0, 0 }
   0x3   :  { %v68_v3 = vsel %vm41_vm0, %v62_v1, 0  ;;  %v128_v4 = vld [vmem:[%s251_s0] sm:$0xff]  ;;  %52 = vmatpush.bf16.msra.mxu0 %v43_v2 }
   0x4   :  { %77 = vmatpush.bf16.msra.mxu1 %v68_v3 }
   0x5   :  { %13 = vsyncpa [#allocation5], 0  ;;  %v133_v5 = vld [vmem:[%s254_s3] ss:$0 sm:$0xff]  ;;  %vm59_vm2 = vcmask 523264   ;;  %s187_s0 = smov [#allocation2]  }
   0x6   :  { %126 = vmatmul.msk.bf16.vlgmr.msra.gmra.mxu0 %vm37_vm1, %v128_v4  ;;  %v134_v6 = vld [vmem:[%s255_s4] ss:$0 sm:$0xff]  ;;  %s90_s2 = sshll.u32 %s187_s0, 4  ;;  %s92_s8 = sshll.u32 %s256_s5, 4  ;;  %s91_s2 = int_to_ptr.vmem [resolvable:$true] %s90_s2  ;;  %s93_s8 = int_to_ptr.hbm [resolvable:$true] %s92_s8 }
   0x7   :  { %127 = vmatmul.msk.bf16.vlgmr.msra.gmra.mxu1 %vm37_vm1, %v128_v4  ;;  %s188_s3 = smov [#allocation4]   ;;  %s105_s4 = sshll.u32 %s257_s6, 4  ;;  %s106_s4 = int_to_ptr.hbm [resolvable:$true] %s105_s4 }
   0x8   :  { %s103_s9 = sshll.u32 %s188_s3, 4  ;;  %s189_s12 = smov 128   ;;  %s104_s9 = int_to_ptr.vmem [resolvable:$true] %s103_s9 }
   0x9   :  { %s190_s5 = smov 8  }
  0x83   :  { %v54_v7 = vpop.f32.mrf.mxu0 }
  0x84   :  { %v79_v8 = vpop.f32.mrf.mxu1  ;;  %v55_v9 = vadd.f32 %v133_v5, %v54_v7 }
  0x85   :  { %v80_v10 = vadd.f32 %v134_v6, %v79_v8 }
  0x86   :  { %60 = vst.msk [vmem:[#allocation2] sm:$0xff] %vm59_vm2, %v55_v9 }
  0x87   :  { %84 = vst.msk [vmem:[#allocation4] sm:$0xff] %vm59_vm2, %v80_v10 }
  0x8b   :  { %v56_v11 = vpop.f32.mrf.mxu0 }
  0x8c   :  { %v81_v12 = vpop.f32.mrf.mxu1  ;;  %v57_v13 = vadd.f32 %v133_v5, %v56_v11 }
  0x8d   :  { %v82_v14 = vadd.f32 %v134_v6, %v81_v12 }
  0x8e   :  { %61 = vst.msk [vmem:[#allocation2 + $0x8] sm:$0xff] %vm59_vm2, %v57_v13 }
  0x8f   :  { %85 = vst.msk [vmem:[#allocation4 + $0x8] sm:$0xff] %vm59_vm2, %v82_v14  ;;  %98 = dma.vmem_to_hbm [thread:$0]  %s91_s2, 256, %s93_s8, [#allocation3], %s189_s12, %s189_s12, %s190_s5  }
  0x90   :  { %111 = dma.vmem_to_hbm [thread:$0]  %s104_s9, 256, %s106_s4, [#allocation5], %s189_s12, %s189_s12, %s190_s5  }
  0x91   :  { %183 = dma.done.wait [#allocation3], 256  }
  0x92   :  { %184 = vsyncadd [#allocation3], 4294967040 }
  0x93   :  { %185 = dma.done.wait [#allocation5], 256  }
  0x94   :  { %186 = vsyncadd [#allocation5], 4294967040 }
  0x95   :  { %120 = vsyncpa [#allocation3], 1 }
  0x96   :  { %121 = vsyncpa [#allocation5], 1 }

</bundles_post_ra>
